<compile_context>
chip_gen: v5e
topology: v5e:2x2
jax: 0.10.0
libtpu: 0.0.40
codegen_flags: <defaults>
</compile_context>

<pallas_src>
import math
from functools import partial

import numpy as np
import jax
import jax.numpy as jnp
from jax.experimental import pallas as pl
from jax.experimental.pallas import tpu as pltpu


def _round_up(x, m):
    return ((x + m - 1) // m) * m


def _cdiv(a, b):
    return -(-a // b)


def _radial_basis_kernel(gamma_ref, d_ref, out_ref, *, num_radial, inv_cutoff,
                         env_a, env_b, env_c, prefactor):
    # gamma_ref : (1, 1) f32 in SMEM     -- softplus(pregamma), computed in wrapper
    # d_ref     : (8, TC) f32            -- raw distances, sublane+lane dense
    # out_ref   : (R, 8, TC)             -- out[k, s, c] = f_k(d[s, c])
    gamma = gamma_ref[0, 0]
    x = d_ref[...] * inv_cutoff                          # (8, TC) scaled distance

    # Polynomial envelope (Horner form), zeroed beyond the cutoff. Pure VPU work.
    x2 = x * x
    x5 = x2 * x2 * x
    env = 1.0 + x5 * (env_a + x * (env_b + x * env_c))
    env = jnp.where(x < 1.0, env, 0.0)                   # (8, TC)

    # One transcendental per distance; everything else is VPU multiplies.
    exp_d = jnp.exp(-gamma * x)                          # (8, TC)
    # Matches torch's (1 - exp_d); -expm1(-gamma*x) would be slightly more
    # accurate for tiny gamma*x but would diverge from the module's math.
    om = 1.0 - exp_d

    R = num_radial
    # om ** j for j = 0..R-1 (None stands for the constant 1 -> no multiply).
    om_pows = [None] * R
    acc = None
    for j in range(1, R):
        acc = om if j == 1 else acc * om
        om_pows[j] = acc

    # env * exp_d**k chain; one full aligned (8, TC) slab store per row k.
    e_env = env
    for k in range(R):
        opk = om_pows[R - 1 - k]
        row = e_env if opk is None else e_env * opk
        pf = prefactor[k]
        if pf != 1.0:
            row = pf * row
        out_ref[k] = row.astype(out_ref.dtype)
        if k + 1 < R:
            e_env = e_env * exp_d


def radial_basis(d, pregamma, *, num_radial, cutoff, envelope_exponent=5,
                 tile_n=65536, out_dtype=jnp.float32, out_layout="NR"):
    """RadialBasis forward (bernstein rbf + polynomial envelope).

    d: (N,) distances.  Returns (N, R) for out_layout="NR" (PyTorch parity) or
    (R, N) for out_layout="RN" (skips the expensive final transpose).
    out_dtype=jnp.bfloat16 halves output HBM traffic for tolerant consumers.
    """
    # TODO(synk): only the bernstein + polynomial-envelope configuration is fused;
    # gaussian / spherical_bessel rbf and the exponential envelope are not.
    d = jnp.asarray(d, jnp.float32).reshape(-1)
    N = d.shape[0]
    R = int(num_radial)

    p = float(envelope_exponent)
    env_a = -(p + 1.0) * (p + 2.0) / 2.0
    env_b = p * (p + 2.0)
    env_c = -p * (p + 1.0) / 2.0
    prefactor = tuple(float(math.comb(R - 1, k)) for k in range(R))

    # softplus(pregamma) once, passed as an SMEM scalar (no per-tile transcendental).
    gamma = jax.nn.softplus(jnp.asarray(pregamma, jnp.float32)).reshape(1, 1)

    # Dense (8, columns) distance layout; pad only to a multiple of 8*128 = 1024
    # distances (bounded waste), not to a multiple of the tile.
    n_pad = _round_up(max(N, 1), 1024)
    npc = n_pad // 8
    d2 = jnp.pad(d, (0, n_pad - N)).reshape(8, npc)      # pad value 0 is harmless

    # tile_c columns per grid step == 8 * tile_c distances per step.
    tile_c = min(_round_up(max(int(tile_n), 1024) // 8, 128), npc)
    # On large inputs keep >= 4 grid steps so both v7x TensorCores get work and
    # double buffering stays active.
    if npc >= 4 * 1024:
        tile_c = min(tile_c, _round_up(_cdiv(npc, 4), 128))
    grid = (_cdiv(npc, tile_c),)

    kernel = partial(_radial_basis_kernel, num_radial=R,
                     inv_cutoff=1.0 / float(cutoff),
                     env_a=env_a, env_b=env_b, env_c=env_c,
                     prefactor=prefactor)

    out_bytes = int(np.dtype(out_dtype).itemsize)
    cost = pl.CostEstimate(flops=48 * n_pad,
                           transcendentals=n_pad,
                           bytes_accessed=4 * n_pad + out_bytes * R * n_pad)

    out3 = pl.pallas_call(
        kernel,
        out_shape=jax.ShapeDtypeStruct((R, 8, npc), out_dtype),
        grid_spec=pltpu.PrefetchScalarGridSpec(
            num_scalar_prefetch=0,
            grid=grid,
            in_specs=[
                pl.BlockSpec(memory_space=pltpu.SMEM),            # gamma (1, 1)
                pl.BlockSpec((8, tile_c), lambda i: (0, i)),      # distances, dense
            ],
            out_specs=pl.BlockSpec((R, 8, tile_c), lambda i: (0, 0, i)),
        ),
        compiler_params=pltpu.CompilerParams(
            dimension_semantics=("parallel",)),
        cost_estimate=cost,
    )(gamma, d2)

    out_rn = out3.reshape(R, n_pad)[:, :N]               # (R, N): contiguous, free
    if out_layout == "RN":
        return out_rn
    # PyTorch (N, R) parity; this transpose dominates end-to-end HBM traffic —
    # callers that can consume (R, N) should use out_layout="RN".
    return out_rn.T


def _reference(d, pregamma, num_radial, cutoff):
    """Pure-JAX reference following the PyTorch forward exactly (pow formulation)."""
    ds = d / cutoff
    p = 5.0
    a = -(p + 1) * (p + 2) / 2
    b = p * (p + 2)
    c = -p * (p + 1) / 2
    env = 1 + a * ds ** p + b * ds ** (p + 1) + c * ds ** (p + 2)
    env = jnp.where(ds < 1.0, env, 0.0)
    gamma = jnp.log1p(jnp.exp(pregamma))                  # softplus
    exp_d = jnp.exp(-gamma * ds)[:, None]
    exp1 = jnp.arange(num_radial, dtype=jnp.float32)[None, :]
    exp2 = (num_radial - 1) - exp1
    prefactor = jnp.asarray(
        [math.comb(num_radial - 1, k) for k in range(num_radial)],
        dtype=jnp.float32)[None, :]
    rbf = prefactor * exp_d ** exp1 * (1.0 - exp_d) ** exp2
    return env[:, None] * rbf


if __name__ == "__main__":
    num_radial = 8
    cutoff = 5.0
    pregamma = jnp.float32(0.45264)

    key_a, key_b = jax.random.split(jax.random.PRNGKey(0))

    # Small case (single grid step); includes d == 0 (the 0**0 corner) and
    # d == cutoff (envelope exactly zero), plus values beyond the cutoff.
    N = 300
    d = jax.random.uniform(key_a, (N,), dtype=jnp.float32,
                           minval=0.0, maxval=1.2 * cutoff)
    d = d.at[0].set(0.0)
    d = d.at[1].set(cutoff)

    out = radial_basis(d, pregamma, num_radial=num_radial, cutoff=cutoff)
    out = jax.block_until_ready(out)
    assert out.shape == (N, num_radial)
    ref = _reference(d, pregamma, num_radial, cutoff)
    np.testing.assert_allclose(np.asarray(out), np.asarray(ref),
                               rtol=2e-4, atol=5e-5)

    out_rn = radial_basis(d, pregamma, num_radial=num_radial, cutoff=cutoff,
                          out_layout="RN")
    out_rn = jax.block_until_ready(out_rn)
    assert out_rn.shape == (num_radial, N)
    np.testing.assert_allclose(np.asarray(out_rn), np.asarray(ref).T,
                               rtol=2e-4, atol=5e-5)

    # Multi-step grid with a ragged last block (exercises padding + write masking).
    N2 = 2600
    d_big = jax.random.uniform(key_b, (N2,), dtype=jnp.float32,
                               minval=0.0, maxval=1.3 * cutoff)
    out2 = radial_basis(d_big, pregamma, num_radial=num_radial, cutoff=cutoff,
                        tile_n=2048, out_layout="RN")
    out2 = jax.block_until_ready(out2)
    assert out2.shape == (num_radial, N2)
    ref2 = _reference(d_big, pregamma, num_radial, cutoff)
    np.testing.assert_allclose(np.asarray(out2), np.asarray(ref2).T,
                               rtol=2e-4, atol=5e-5)

    print("KERNEL_OK")
</pallas_src>

<mosaic_0001>
module attributes {stable_mosaic.version = 11 : i64} {
  func.func @_radial_basis_kernel(%arg0: i32, %arg1: memref<1x1xf32, #tpu.memory_space<smem>>, %arg2: memref<8x128xf32, #tpu.memory_space<vmem>>, %arg3: memref<8x8x128xf32, #tpu.memory_space<vmem>>) attributes {dimension_semantics = [#tpu.dimension_semantics<parallel>], iteration_bounds = array<i64: 1>, scalar_prefetch = 0 : i64, scratch_operands = 0 : i64, tpu.core_type = #tpu.core_type<tc>, window_params = [{transform_indices = @transform_0, window_bounds = array<i64: 1, 1>}, {transform_indices = @transform_1, window_bounds = array<i64: 8, 128>}, {transform_indices = @transform_2, window_bounds = array<i64: 8, 8, 128>}]} {
    %c0 = arith.constant 0 : index
    %c0_0 = arith.constant 0 : index
    %0 = memref.load %arg1[%c0, %c0_0] : memref<1x1xf32, #tpu.memory_space<smem>>
    %c0_1 = arith.constant 0 : index
    %c0_2 = arith.constant 0 : index
    %1 = vector.load %arg2[%c0_1, %c0_2] : memref<8x128xf32, #tpu.memory_space<vmem>>, vector<8x128xf32>
    %cst = arith.constant 2.000000e-01 : f32
    %2 = vector.broadcast %cst : f32 to vector<8x128xf32>
    %3 = arith.mulf %1, %2 : vector<8x128xf32>
    %4 = arith.mulf %3, %3 : vector<8x128xf32>
    %5 = arith.mulf %4, %4 : vector<8x128xf32>
    %6 = arith.mulf %5, %3 : vector<8x128xf32>
    %cst_3 = arith.constant -1.500000e+01 : f32
    %7 = vector.broadcast %cst_3 : f32 to vector<8x128xf32>
    %8 = arith.mulf %3, %7 : vector<8x128xf32>
    %cst_4 = arith.constant 3.500000e+01 : f32
    %9 = vector.broadcast %cst_4 : f32 to vector<8x128xf32>
    %10 = arith.addf %9, %8 : vector<8x128xf32>
    %11 = arith.mulf %3, %10 : vector<8x128xf32>
    %cst_5 = arith.constant -2.100000e+01 : f32
    %12 = vector.broadcast %cst_5 : f32 to vector<8x128xf32>
    %13 = arith.addf %12, %11 : vector<8x128xf32>
    %14 = arith.mulf %6, %13 : vector<8x128xf32>
    %cst_6 = arith.constant 1.000000e+00 : f32
    %15 = vector.broadcast %cst_6 : f32 to vector<8x128xf32>
    %16 = arith.addf %15, %14 : vector<8x128xf32>
    %cst_7 = arith.constant 1.000000e+00 : f32
    %17 = vector.broadcast %cst_7 : f32 to vector<8x128xf32>
    %18 = arith.cmpf olt, %3, %17 : vector<8x128xf32>
    %cst_8 = arith.constant 0.000000e+00 : f32
    %19 = vector.broadcast %cst_8 : f32 to vector<8x128xf32>
    %20 = arith.select %18, %16, %19 : vector<8x128xi1>, vector<8x128xf32>
    %cst_9 = arith.constant 0.000000e+00 : f32
    %21 = arith.subf %cst_9, %0 : f32
    %22 = vector.broadcast %21 : f32 to vector<8x128xf32>
    %23 = arith.mulf %22, %3 : vector<8x128xf32>
    %24 = math.exp %23 : vector<8x128xf32>
    %cst_10 = arith.constant 1.000000e+00 : f32
    %25 = vector.broadcast %cst_10 : f32 to vector<8x128xf32>
    %26 = arith.subf %25, %24 : vector<8x128xf32>
    %27 = arith.mulf %26, %26 : vector<8x128xf32>
    %28 = arith.mulf %27, %26 : vector<8x128xf32>
    %29 = arith.mulf %28, %26 : vector<8x128xf32>
    %30 = arith.mulf %29, %26 : vector<8x128xf32>
    %31 = arith.mulf %30, %26 : vector<8x128xf32>
    %32 = arith.mulf %31, %26 : vector<8x128xf32>
    %33 = arith.mulf %20, %32 : vector<8x128xf32>
    %c0_11 = arith.constant 0 : index
    %c0_12 = arith.constant 0 : index
    %c0_13 = arith.constant 0 : index
    %34 = vector.load %arg3[%c0_11, %c0_12, %c0_13] : memref<8x8x128xf32, #tpu.memory_space<vmem>>, vector<1x8x128xf32>
    %35 = vector.shape_cast %34 : vector<1x8x128xf32> to vector<8x128xf32>
    %36 = vector.shape_cast %33 : vector<8x128xf32> to vector<1x8x128xf32>
    tpu.vector_store %arg3[%c0_11, %c0_12, %c0_13], %36 {strides = array<i32>} : memref<8x8x128xf32, #tpu.memory_space<vmem>>, vector<1x8x128xf32>,
    %37 = arith.mulf %20, %24 : vector<8x128xf32>
    %38 = arith.mulf %37, %31 : vector<8x128xf32>
    %cst_14 = arith.constant 7.000000e+00 : f32
    %39 = vector.broadcast %cst_14 : f32 to vector<8x128xf32>
    %40 = arith.mulf %39, %38 : vector<8x128xf32>
    %c1 = arith.constant 1 : index
    %c0_15 = arith.constant 0 : index
    %c0_16 = arith.constant 0 : index
    %41 = vector.load %arg3[%c1, %c0_15, %c0_16] : memref<8x8x128xf32, #tpu.memory_space<vmem>>, vector<1x8x128xf32>
    %42 = vector.shape_cast %41 : vector<1x8x128xf32> to vector<8x128xf32>
    %43 = vector.shape_cast %40 : vector<8x128xf32> to vector<1x8x128xf32>
    tpu.vector_store %arg3[%c1, %c0_15, %c0_16], %43 {strides = array<i32>} : memref<8x8x128xf32, #tpu.memory_space<vmem>>, vector<1x8x128xf32>,
    %44 = arith.mulf %37, %24 : vector<8x128xf32>
    %45 = arith.mulf %44, %30 : vector<8x128xf32>
    %cst_17 = arith.constant 2.100000e+01 : f32
    %46 = vector.broadcast %cst_17 : f32 to vector<8x128xf32>
    %47 = arith.mulf %46, %45 : vector<8x128xf32>
    %c2 = arith.constant 2 : index
    %c0_18 = arith.constant 0 : index
    %c0_19 = arith.constant 0 : index
    %48 = vector.load %arg3[%c2, %c0_18, %c0_19] : memref<8x8x128xf32, #tpu.memory_space<vmem>>, vector<1x8x128xf32>
    %49 = vector.shape_cast %48 : vector<1x8x128xf32> to vector<8x128xf32>
    %50 = vector.shape_cast %47 : vector<8x128xf32> to vector<1x8x128xf32>
    tpu.vector_store %arg3[%c2, %c0_18, %c0_19], %50 {strides = array<i32>} : memref<8x8x128xf32, #tpu.memory_space<vmem>>, vector<1x8x128xf32>,
    %51 = arith.mulf %44, %24 : vector<8x128xf32>
    %52 = arith.mulf %51, %29 : vector<8x128xf32>
    %cst_20 = arith.constant 3.500000e+01 : f32
    %53 = vector.broadcast %cst_20 : f32 to vector<8x128xf32>
    %54 = arith.mulf %53, %52 : vector<8x128xf32>
    %c3 = arith.constant 3 : index
    %c0_21 = arith.constant 0 : index
    %c0_22 = arith.constant 0 : index
    %55 = vector.load %arg3[%c3, %c0_21, %c0_22] : memref<8x8x128xf32, #tpu.memory_space<vmem>>, vector<1x8x128xf32>
    %56 = vector.shape_cast %55 : vector<1x8x128xf32> to vector<8x128xf32>
    %57 = vector.shape_cast %54 : vector<8x128xf32> to vector<1x8x128xf32>
    tpu.vector_store %arg3[%c3, %c0_21, %c0_22], %57 {strides = array<i32>} : memref<8x8x128xf32, #tpu.memory_space<vmem>>, vector<1x8x128xf32>,
    %58 = arith.mulf %51, %24 : vector<8x128xf32>
    %59 = arith.mulf %58, %28 : vector<8x128xf32>
    %cst_23 = arith.constant 3.500000e+01 : f32
    %60 = vector.broadcast %cst_23 : f32 to vector<8x128xf32>
    %61 = arith.mulf %60, %59 : vector<8x128xf32>
    %c4 = arith.constant 4 : index
    %c0_24 = arith.constant 0 : index
    %c0_25 = arith.constant 0 : index
    %62 = vector.load %arg3[%c4, %c0_24, %c0_25] : memref<8x8x128xf32, #tpu.memory_space<vmem>>, vector<1x8x128xf32>
    %63 = vector.shape_cast %62 : vector<1x8x128xf32> to vector<8x128xf32>
    %64 = vector.shape_cast %61 : vector<8x128xf32> to vector<1x8x128xf32>
    tpu.vector_store %arg3[%c4, %c0_24, %c0_25], %64 {strides = array<i32>} : memref<8x8x128xf32, #tpu.memory_space<vmem>>, vector<1x8x128xf32>,
    %65 = arith.mulf %58, %24 : vector<8x128xf32>
    %66 = arith.mulf %65, %27 : vector<8x128xf32>
    %cst_26 = arith.constant 2.100000e+01 : f32
    %67 = vector.broadcast %cst_26 : f32 to vector<8x128xf32>
    %68 = arith.mulf %67, %66 : vector<8x128xf32>
    %c5 = arith.constant 5 : index
    %c0_27 = arith.constant 0 : index
    %c0_28 = arith.constant 0 : index
    %69 = vector.load %arg3[%c5, %c0_27, %c0_28] : memref<8x8x128xf32, #tpu.memory_space<vmem>>, vector<1x8x128xf32>
    %70 = vector.shape_cast %69 : vector<1x8x128xf32> to vector<8x128xf32>
    %71 = vector.shape_cast %68 : vector<8x128xf32> to vector<1x8x128xf32>
    tpu.vector_store %arg3[%c5, %c0_27, %c0_28], %71 {strides = array<i32>} : memref<8x8x128xf32, #tpu.memory_space<vmem>>, vector<1x8x128xf32>,
    %72 = arith.mulf %65, %24 : vector<8x128xf32>
    %73 = arith.mulf %72, %26 : vector<8x128xf32>
    %cst_29 = arith.constant 7.000000e+00 : f32
    %74 = vector.broadcast %cst_29 : f32 to vector<8x128xf32>
    %75 = arith.mulf %74, %73 : vector<8x128xf32>
    %c6 = arith.constant 6 : index
    %c0_30 = arith.constant 0 : index
    %c0_31 = arith.constant 0 : index
    %76 = vector.load %arg3[%c6, %c0_30, %c0_31] : memref<8x8x128xf32, #tpu.memory_space<vmem>>, vector<1x8x128xf32>
    %77 = vector.shape_cast %76 : vector<1x8x128xf32> to vector<8x128xf32>
    %78 = vector.shape_cast %75 : vector<8x128xf32> to vector<1x8x128xf32>
    tpu.vector_store %arg3[%c6, %c0_30, %c0_31], %78 {strides = array<i32>} : memref<8x8x128xf32, #tpu.memory_space<vmem>>, vector<1x8x128xf32>,
    %79 = arith.mulf %72, %24 : vector<8x128xf32>
    %c7 = arith.constant 7 : index
    %c0_32 = arith.constant 0 : index
    %c0_33 = arith.constant 0 : index
    %80 = vector.load %arg3[%c7, %c0_32, %c0_33] : memref<8x8x128xf32, #tpu.memory_space<vmem>>, vector<1x8x128xf32>
    %81 = vector.shape_cast %80 : vector<1x8x128xf32> to vector<8x128xf32>
    %82 = vector.shape_cast %79 : vector<8x128xf32> to vector<1x8x128xf32>
    tpu.vector_store %arg3[%c7, %c0_32, %c0_33], %82 {strides = array<i32>} : memref<8x8x128xf32, #tpu.memory_space<vmem>>, vector<1x8x128xf32>,
    return
  }
  func.func @transform_0(%arg0: i32) -> (i32, i32) {
    %c0_i32 = arith.constant 0 : i32
    %c0_i32_0 = arith.constant 0 : i32
    %c0_i32_1 = arith.constant 0 : i32
    return %c0_i32, %c0_i32_0 : i32, i32
  }
  func.func @transform_1(%arg0: i32) -> (i32, i32) {
    %c0_i32 = arith.constant 0 : i32
    %c0_i32_0 = arith.constant 0 : i32
    return %c0_i32, %arg0 : i32, i32
  }
  func.func @transform_2(%arg0: i32) -> (i32, i32, i32) {
    %c0_i32 = arith.constant 0 : i32
    %c0_i32_0 = arith.constant 0 : i32
    %c0_i32_1 = arith.constant 0 : i32
    return %c0_i32, %c0_i32_0, %arg0 : i32, i32, i32
  }
}

</mosaic_0001>

<bundles_post_ra>
// kernel: tpu_custom_call.1
= control target key start
LH: loop header
LB: loop body
LE: loop exit
PB: predicated region body
PF: predicated region fallthrough
CT: control target
= control target key end

     0   :  { %8 = vsyncpa [#allocation4], 0  ;;  %s193_s0 = inlined_call_operand.<no memory space> [shape: f32[1,1], index: 0, kind: input, shape index: {}]   ;;  %s194_s1 = inlined_call_operand.hbm [shape: f32[8,128], index: 1, kind: input, shape index: {}]   ;;  %s195_s2 = inlined_call_operand.hbm [shape: f32[8,8,128], index: 2, kind: output, shape index: {}]  }
   0x1   :  { %9 = vsyncpa [#allocation5], 0  ;;  %s17_s11 = sshll.u32 %s194_s1, 4  ;;  %s165_s12 = smov [#allocation3]   ;;  %s18_s11 = int_to_ptr.hbm [resolvable:$true] %s17_s11 }
   0x2   :  { %s19_s13 = sshll.u32 %s165_s12, 4  ;;  %s20_s13 = int_to_ptr.vmem [resolvable:$true] %s19_s13 }
   0x3   :  { %22 = dma.hbm_to_vmem [thread:$0]  %s18_s11, 128, %s20_s13, [#allocation4]  }
   0x4   :  { %161 = dma.done.wait [#allocation4], 128  }
   0x5   :  { %162 = vsyncadd [#allocation4], 4294967168  ;;  %s41_s16 = ssub.f32 0.0, %s193_s0  ;;  %v28_v0 = vld [vmem:[#allocation3] sm:$0xff]  ;;  %s166_s0 = smov [#allocation6]  }
   0x6   :  { %v29_v2 = vmul.f32 0.2, %v28_v0  ;;  %s92_s1 = sshll.u32 %s166_s0, 4  ;;  %s94_s19 = sshll.u32 %s195_s2, 4  ;;  %s93_s1 = int_to_ptr.vmem [resolvable:$true] %s92_s1  ;;  %s95_s19 = int_to_ptr.hbm [resolvable:$true] %s94_s19 }
   0x7   :  { %v42_v1 = vstv %s41_s16  ;;  %s167_s20 = smov 128   ;;  %s168_s21 = smov 8  }
   0x8   :  { %v30_v3 = vmul.f32 %v29_v2, %v29_v2  ;;  %v33_v4 = vmul.f32 -15.0, %v29_v2  ;;  %v43_v5 = vmul.f32 %v42_v1, %v29_v2  ;;  %vm39_vm0 = vcmp.lt.f32.partialorder %v29_v2, 1.0 }
   0xa   :  { %v31_v6 = vmul.f32 %v30_v3, %v30_v3  ;;  %v34_v7 = vadd.f32 35.0, %v33_v4  ;;  %v44_v8 = vmul.f32 1.442695, %v43_v5 }
   0xc   :  { %v32_v9 = vmul.f32 %v31_v6, %v29_v2  ;;  %v35_v10 = vmul.f32 %v34_v7, %v29_v2  ;;  %111 = vpow2.f32 %v44_v8 }
   0xe   :  { %v36_v11 = vadd.f32 -21.0, %v35_v10 }
  0x10   :  { %v37_v12 = vmul.f32 %v36_v11, %v32_v9 }
  0x12   :  { %v112_v13 = vpop.eup %111  ;;  %v38_v14 = vadd.f32 1.0, %v37_v12 }
  0x13   :  { %v46_v15 = vsub.f32 1.0, %v112_v13 }
  0x14   :  { %v40_v16 = vsel %vm39_vm0, %v38_v14, 0.0 }
  0x15   :  { %v47_v17 = vmul.f32 %v46_v15, %v46_v15  ;;  %v55_v18 = vmul.f32 %v112_v13, %v40_v16 }
  0x17   :  { %v48_v19 = vmul.f32 %v47_v17, %v46_v15  ;;  %v60_v20 = vmul.f32 %v112_v13, %v55_v18 }
  0x19   :  { %v49_v21 = vmul.f32 %v48_v19, %v46_v15  ;;  %v65_v22 = vmul.f32 %v112_v13, %v60_v20 }
  0x1b   :  { %v50_v23 = vmul.f32 %v49_v21, %v46_v15  ;;  %v66_v24 = vmul.f32 %v65_v22, %v49_v21  ;;  %v70_v25 = vmul.f32 %v112_v13, %v65_v22 }
  0x1d   :  { %v51_v26 = vmul.f32 %v50_v23, %v46_v15  ;;  %v61_v27 = vmul.f32 %v60_v20, %v50_v23  ;;  %v67_v28 = vmul.f32 35.0, %v66_v24  ;;  %v71_v29 = vmul.f32 %v70_v25, %v48_v19 }
  0x1e   :  { %v75_v30 = vmul.f32 %v112_v13, %v70_v25 }
  0x1f   :  { %v52_v31 = vmul.f32 %v51_v26, %v46_v15  ;;  %v56_v32 = vmul.f32 %v55_v18, %v51_v26  ;;  %v62_v33 = vmul.f32 21.0, %v61_v27  ;;  %69 = vst [vmem:[#allocation6 + $0x18] sm:$0xff] %v67_v28  ;;  %v72_v34 = vmul.f32 35.0, %v71_v29 }
  0x20   :  { %v76_v35 = vmul.f32 %v75_v30, %v47_v17  ;;  %v80_v36 = vmul.f32 %v112_v13, %v75_v30 }
  0x21   :  { %v53_v37 = vmul.f32 %v52_v31, %v40_v16  ;;  %v57_v38 = vmul.f32 7.0, %v56_v32  ;;  %64 = vst [vmem:[#allocation6 + $0x10] sm:$0xff] %v62_v33 }
  0x22   :  { %74 = vst [vmem:[#allocation6 + $0x20] sm:$0xff] %v72_v34  ;;  %v77_v39 = vmul.f32 21.0, %v76_v35  ;;  %v81_v40 = vmul.f32 %v80_v36, %v46_v15  ;;  %v85_v41 = vmul.f32 %v112_v13, %v80_v36 }
  0x23   :  { %54 = vst [vmem:[#allocation6] sm:$0xff] %v53_v37 }
  0x24   :  { %59 = vst [vmem:[#allocation6 + $0x8] sm:$0xff] %v57_v38  ;;  %v82_v42 = vmul.f32 7.0, %v81_v40 }
  0x25   :  { %79 = vst [vmem:[#allocation6 + $0x28] sm:$0xff] %v77_v39 }
  0x26   :  { %84 = vst [vmem:[#allocation6 + $0x30] sm:$0xff] %v82_v42 }
  0x27   :  { %87 = vst [vmem:[#allocation6 + $0x38] sm:$0xff] %v85_v41 }
  0x28   :  { %100 = dma.vmem_to_hbm [thread:$0]  %s93_s1, 1024, %s95_s19, [#allocation5], %s167_s20, %s167_s20, %s168_s21  }
  0x29   :  { %163 = dma.done.wait [#allocation5], 1024  }
  0x2a   :  { %164 = vsyncadd [#allocation5], 4294966272 }
  0x2b   :  { %105 = vsyncpa [#allocation4], 1 }
  0x2c   :  { %106 = vsyncpa [#allocation5], 1 }

</bundles_post_ra>
